<compile_context>
chip_gen: v7x
topology: tpu7x:2x2x1
jax: 0.10.0
libtpu: 0.0.40
codegen_flags: <defaults>
</compile_context>

<pallas_src>
import functools

import jax
import jax.numpy as jnp
from jax import lax
from jax.experimental import pallas as pl
from jax.experimental.pallas import tpu as pltpu


# ---------------------------------------------------------------------------
# Phase 1: per-feature masked statistics -> A-1 = inv_std*gamma - 1, C = beta - mean*A
# ---------------------------------------------------------------------------
def _stats_kernel_masked(x_ref, m_ref, g_ref, b_ref, a1_ref, c_ref,
                         sx_ref, sx2_ref, cnt_ref, *, eps):
    i = pl.program_id(0)

    @pl.when(i == 0)
    def _init():
        sx_ref[...] = jnp.zeros_like(sx_ref)
        sx2_ref[...] = jnp.zeros_like(sx2_ref)
        cnt_ref[...] = jnp.zeros_like(cnt_ref)

    x = x_ref[...].astype(jnp.float32)          # (TILE, D)
    m = m_ref[...]                              # (TILE, 1) 0/1 f32
    xm = x * m
    sx_ref[...] += jnp.sum(xm, axis=0, keepdims=True)        # sum m*x     (1, D)
    sx2_ref[...] += jnp.sum(xm * x, axis=0, keepdims=True)   # sum m*x^2   (1, D)
    cnt_ref[...] += jnp.sum(m, axis=0, keepdims=True)        # sum m       (1, 1)

    @pl.when(i == pl.num_programs(0) - 1)
    def _finalize():
        cnt = jnp.maximum(cnt_ref[...], 1.0)                  # all-False mask stays finite
        inv_cnt = 1.0 / cnt                                   # single exact divide
        mean = sx_ref[...] * inv_cnt
        var = jnp.maximum(sx2_ref[...] * inv_cnt - mean * mean, 0.0)  # biased var (torch BN)
        a = lax.rsqrt(var + eps) * g_ref[...]                 # EUP rsqrt
        a1_ref[...] = a - 1.0
        c_ref[...] = b_ref[...] - mean * a


def _stats_kernel_nomask(x_ref, g_ref, b_ref, a_ref, c_ref,
                         sx_ref, sx2_ref, *, eps, inv_cnt):
    i = pl.program_id(0)

    @pl.when(i == 0)
    def _init():
        sx_ref[...] = jnp.zeros_like(sx_ref)
        sx2_ref[...] = jnp.zeros_like(sx2_ref)

    x = x_ref[...].astype(jnp.float32)
    sx_ref[...] += jnp.sum(x, axis=0, keepdims=True)
    sx2_ref[...] += jnp.sum(x * x, axis=0, keepdims=True)

    @pl.when(i == pl.num_programs(0) - 1)
    def _finalize():
        mean = sx_ref[...] * inv_cnt
        var = jnp.maximum(sx2_ref[...] * inv_cnt - mean * mean, 0.0)
        a = lax.rsqrt(var + eps) * g_ref[...]
        a_ref[...] = a
        c_ref[...] = b_ref[...] - mean * a


# ---------------------------------------------------------------------------
# Phase 2: normalize + masked_scatter, fused:  out = x + m * (x*(A-1) + C)
# ---------------------------------------------------------------------------
def _norm_kernel_masked(x_ref, m_ref, a1_ref, c_ref, o_ref):
    x = x_ref[...].astype(jnp.float32)
    m = m_ref[...]
    o_ref[...] = (x + m * (x * a1_ref[...] + c_ref[...])).astype(o_ref.dtype)


def _norm_kernel_nomask(x_ref, a_ref, c_ref, o_ref):
    x = x_ref[...].astype(jnp.float32)
    o_ref[...] = (x * a_ref[...] + c_ref[...]).astype(o_ref.dtype)


# ---------------------------------------------------------------------------
# Wrapper
# ---------------------------------------------------------------------------
def _round_up(a, b):
    return ((a + b - 1) // b) * b


def _choose_row_tile(n, d, itemsize):
    # ~1 MiB x-tile, multiple of 8 rows, capped at 4096 rows.
    rows = max(8, ((1 << 20) // max(d * itemsize, 1)) // 8 * 8)
    rows = min(rows, 4096)
    if n <= rows:
        return _round_up(n, 8)
    return rows


def masked_batch_norm_1d(x, gamma, beta, mask=None, eps=1e-5):
    """x: (b, t, d); mask: (b, t) bool or None; gamma/beta: (d,) -> (b, t, d) in x.dtype."""
    b, t, d = x.shape
    n = b * t
    out_dtype = x.dtype

    x2 = x.reshape(n, d)                                      # keep native dtype
    g2 = gamma.reshape(1, d).astype(jnp.float32)
    b2 = beta.reshape(1, d).astype(jnp.float32)

    tile = _choose_row_tile(n, d, jnp.dtype(out_dtype).itemsize)
    n_pad = _round_up(n, tile)
    if n_pad != n:                                            # zero rows: no effect on sums
        x2 = jnp.pad(x2, ((0, n_pad - n), (0, 0)))
    num_tiles = n_pad // tile

    x_spec = pl.BlockSpec((tile, d), lambda i: (i, 0))
    m_spec = pl.BlockSpec((tile, 1), lambda i: (i, 0))
    f_spec = pl.BlockSpec((1, d), lambda i: (0, 0))           # per-feature vectors

    if mask is not None:
        m2 = mask.reshape(n, 1).astype(jnp.float32)
        if n_pad != n:
            m2 = jnp.pad(m2, ((0, n_pad - n), (0, 0)))

        a1, c = pl.pallas_call(
            functools.partial(_stats_kernel_masked, eps=float(eps)),
            out_shape=(jax.ShapeDtypeStruct((1, d), jnp.float32),
                       jax.ShapeDtypeStruct((1, d), jnp.float32)),
            grid=(num_tiles,),
            in_specs=[x_spec, m_spec, f_spec, f_spec],
            out_specs=(f_spec, f_spec),
            scratch_shapes=[pltpu.VMEM((1, d), jnp.float32),
                            pltpu.VMEM((1, d), jnp.float32),
                            pltpu.VMEM((1, 1), jnp.float32)],
            compiler_params=pltpu.CompilerParams(dimension_semantics=("arbitrary",)),
        )(x2, m2, g2, b2)

        out = pl.pallas_call(
            _norm_kernel_masked,
            out_shape=jax.ShapeDtypeStruct((n_pad, d), out_dtype),
            grid=(num_tiles,),
            in_specs=[x_spec, m_spec, f_spec, f_spec],
            out_specs=x_spec,
            compiler_params=pltpu.CompilerParams(dimension_semantics=("parallel",)),
        )(x2, m2, a1, c)
    else:
        # unmasked: padded rows are zeros -> contribute nothing to sums; divide by true n.
        a, c = pl.pallas_call(
            functools.partial(_stats_kernel_nomask, eps=float(eps), inv_cnt=1.0 / float(n)),
            out_shape=(jax.ShapeDtypeStruct((1, d), jnp.float32),
                       jax.ShapeDtypeStruct((1, d), jnp.float32)),
            grid=(num_tiles,),
            in_specs=[x_spec, f_spec, f_spec],
            out_specs=(f_spec, f_spec),
            scratch_shapes=[pltpu.VMEM((1, d), jnp.float32),
                            pltpu.VMEM((1, d), jnp.float32)],
            compiler_params=pltpu.CompilerParams(dimension_semantics=("arbitrary",)),
        )(x2, g2, b2)

        out = pl.pallas_call(
            _norm_kernel_nomask,
            out_shape=jax.ShapeDtypeStruct((n_pad, d), out_dtype),
            grid=(num_tiles,),
            in_specs=[x_spec, f_spec, f_spec],
            out_specs=x_spec,
            compiler_params=pltpu.CompilerParams(dimension_semantics=("parallel",)),
        )(x2, a, c)

    if n_pad != n:
        out = out[:n]
    return out.reshape(b, t, d)


# ---------------------------------------------------------------------------
# Pure-JAX references
# ---------------------------------------------------------------------------
def _ref(x, mask, gamma, beta, eps=1e-5):
    m = mask.astype(jnp.float32)[..., None]
    x = x.astype(jnp.float32)
    cnt = jnp.maximum(jnp.sum(m), 1.0)
    mean = jnp.sum(x * m, axis=(0, 1), keepdims=True) / cnt
    var = jnp.sum(jnp.square((x - mean) * m), axis=(0, 1), keepdims=True) / cnt
    y = (x - mean) / jnp.sqrt(var + eps) * gamma + beta
    return jnp.where(m > 0, y, x)


def _ref_nomask(x, gamma, beta, eps=1e-5):
    x = x.astype(jnp.float32)
    mean = jnp.mean(x, axis=(0, 1), keepdims=True)
    var = jnp.mean(jnp.square(x - mean), axis=(0, 1), keepdims=True)
    return (x - mean) / jnp.sqrt(var + eps) * gamma + beta


if __name__ == "__main__":
    B, T, D = 2, 16, 128
    key = jax.random.PRNGKey(0)
    kx, km, kg, kb = jax.random.split(key, 4)
    x = jax.random.normal(kx, (B, T, D), jnp.float32) * 2.0 + 0.5
    mask = jax.random.bernoulli(km, 0.7, (B, T))
    gamma = 1.0 + 0.1 * jax.random.normal(kg, (D,), jnp.float32)
    beta = 0.1 * jax.random.normal(kb, (D,), jnp.float32)

    fwd = jax.jit(masked_batch_norm_1d)

    # masked, f32
    out = fwd(x, gamma, beta, mask)
    jax.block_until_ready(out)
    assert out.shape == (B, T, D), out.shape
    assert bool(jnp.all(jnp.isfinite(out)))
    ref = _ref(x, mask, gamma, beta)
    assert bool(jnp.allclose(out, ref, rtol=1e-4, atol=1e-4)), float(jnp.max(jnp.abs(out - ref)))

    # masked, bf16 I/O (native-dtype path)
    xb = x.astype(jnp.bfloat16)
    out_bf = fwd(xb, gamma, beta, mask)
    jax.block_until_ready(out_bf)
    assert out_bf.dtype == jnp.bfloat16
    ref_bf = _ref(xb.astype(jnp.float32), mask, gamma, beta)
    assert bool(jnp.allclose(out_bf.astype(jnp.float32), ref_bf, rtol=3e-2, atol=3e-2))

    # mask=None path (plain BatchNorm1d over all b*t rows)
    out_nm = jax.jit(lambda a, g, bb: masked_batch_norm_1d(a, g, bb, None))(x, gamma, beta)
    jax.block_until_ready(out_nm)
    ref_nm = _ref_nomask(x, gamma, beta)
    assert bool(jnp.allclose(out_nm, ref_nm, rtol=1e-4, atol=1e-4))

    # ragged row count (exercises padding path: n = 15 -> padded to 16)
    B2, T2 = 3, 5
    x3 = jax.random.normal(kx, (B2, T2, D), jnp.float32)
    mask3 = jax.random.bernoulli(km, 0.6, (B2, T2))
    out3 = fwd(x3, gamma, beta, mask3)
    jax.block_until_ready(out3)
    ref3 = _ref(x3, mask3, gamma, beta)
    assert bool(jnp.allclose(out3, ref3, rtol=1e-4, atol=1e-4))

    print("KERNEL_OK")
</pallas_src>

<mosaic_0001>
module attributes {stable_mosaic.version = 11 : i64} {
  func.func @_norm_kernel_masked(%arg0: i32, %arg1: memref<32x128xf32, #tpu.memory_space<vmem>>, %arg2: memref<32x1xf32, #tpu.memory_space<vmem>>, %arg3: memref<1x128xf32, #tpu.memory_space<vmem>>, %arg4: memref<1x128xf32, #tpu.memory_space<vmem>>, %arg5: memref<32x128xf32, #tpu.memory_space<vmem>>) attributes {dimension_semantics = [#tpu.dimension_semantics<parallel>], iteration_bounds = array<i64: 1>, scalar_prefetch = 0 : i64, scratch_operands = 0 : i64, tpu.core_type = #tpu.core_type<tc>, window_params = [{transform_indices = @transform_0, window_bounds = array<i64: 32, 128>}, {transform_indices = @transform_1, window_bounds = array<i64: 32, 1>}, {pipeline_mode = #tpu.pipeline_mode<synchronous>, transform_indices = @transform_2, window_bounds = array<i64: 1, 128>}, {pipeline_mode = #tpu.pipeline_mode<synchronous>, transform_indices = @transform_3, window_bounds = array<i64: 1, 128>}, {transform_indices = @transform_4, window_bounds = array<i64: 32, 128>}]} {
    %c0 = arith.constant 0 : index
    %c0_0 = arith.constant 0 : index
    %0 = vector.load %arg1[%c0, %c0_0] : memref<32x128xf32, #tpu.memory_space<vmem>>, vector<32x128xf32>
    %c0_1 = arith.constant 0 : index
    %c0_2 = arith.constant 0 : index
    %1 = vector.load %arg2[%c0_1, %c0_2] : memref<32x1xf32, #tpu.memory_space<vmem>>, vector<32x1xf32>
    %c0_3 = arith.constant 0 : index
    %c0_4 = arith.constant 0 : index
    %2 = vector.load %arg3[%c0_3, %c0_4] : memref<1x128xf32, #tpu.memory_space<vmem>>, vector<1x128xf32>
    %3 = vector.broadcast %2 : vector<1x128xf32> to vector<32x128xf32>
    %4 = arith.mulf %0, %3 : vector<32x128xf32>
    %c0_5 = arith.constant 0 : index
    %c0_6 = arith.constant 0 : index
    %5 = vector.load %arg4[%c0_5, %c0_6] : memref<1x128xf32, #tpu.memory_space<vmem>>, vector<1x128xf32>
    %6 = vector.broadcast %5 : vector<1x128xf32> to vector<32x128xf32>
    %7 = arith.addf %4, %6 : vector<32x128xf32>
    %8 = vector.broadcast %1 : vector<32x1xf32> to vector<32x128xf32>
    %9 = arith.mulf %8, %7 : vector<32x128xf32>
    %10 = arith.addf %0, %9 : vector<32x128xf32>
    %c0_7 = arith.constant 0 : index
    %c0_8 = arith.constant 0 : index
    %11 = vector.load %arg5[%c0_7, %c0_8] : memref<32x128xf32, #tpu.memory_space<vmem>>, vector<32x128xf32>
    tpu.vector_store %arg5[%c0_7, %c0_8], %10 {strides = array<i32>} : memref<32x128xf32, #tpu.memory_space<vmem>>, vector<32x128xf32>,
    return
  }
  func.func @transform_0(%arg0: i32) -> (i32, i32) {
    %c0_i32 = arith.constant 0 : i32
    %c0_i32_0 = arith.constant 0 : i32
    return %arg0, %c0_i32 : i32, i32
  }
  func.func @transform_1(%arg0: i32) -> (i32, i32) {
    %c0_i32 = arith.constant 0 : i32
    %c0_i32_0 = arith.constant 0 : i32
    return %arg0, %c0_i32 : i32, i32
  }
  func.func @transform_2(%arg0: i32) -> (i32, i32) {
    %c0_i32 = arith.constant 0 : i32
    %c0_i32_0 = arith.constant 0 : i32
    %c0_i32_1 = arith.constant 0 : i32
    return %c0_i32, %c0_i32_0 : i32, i32
  }
  func.func @transform_3(%arg0: i32) -> (i32, i32) {
    %c0_i32 = arith.constant 0 : i32
    %c0_i32_0 = arith.constant 0 : i32
    %c0_i32_1 = arith.constant 0 : i32
    return %c0_i32, %c0_i32_0 : i32, i32
  }
  func.func @transform_4(%arg0: i32) -> (i32, i32) {
    %c0_i32 = arith.constant 0 : i32
    %c0_i32_0 = arith.constant 0 : i32
    return %arg0, %c0_i32 : i32, i32
  }
}

module attributes {stable_mosaic.version = 11 : i64} {
  func.func @_stats_kernel_masked(%arg0: i32, %arg1: memref<32x128xf32, #tpu.memory_space<vmem>>, %arg2: memref<32x1xf32, #tpu.memory_space<vmem>>, %arg3: memref<1x128xf32, #tpu.memory_space<vmem>>, %arg4: memref<1x128xf32, #tpu.memory_space<vmem>>, %arg5: memref<1x128xf32, #tpu.memory_space<vmem>>, %arg6: memref<1x128xf32, #tpu.memory_space<vmem>>, %arg7: memref<1x128xf32, #tpu.memory_space<vmem>>, %arg8: memref<1x128xf32, #tpu.memory_space<vmem>>, %arg9: memref<1x1xf32, #tpu.memory_space<vmem>>) attributes {dimension_semantics = [#tpu.dimension_semantics<arbitrary>], iteration_bounds = array<i64: 1>, scalar_prefetch = 0 : i64, scratch_operands = 3 : i64, tpu.core_type = #tpu.core_type<tc>, window_params = [{transform_indices = @transform_0, window_bounds = array<i64: 32, 128>}, {transform_indices = @transform_1, window_bounds = array<i64: 32, 1>}, {pipeline_mode = #tpu.pipeline_mode<synchronous>, transform_indices = @transform_2, window_bounds = array<i64: 1, 128>}, {pipeline_mode = #tpu.pipeline_mode<synchronous>, transform_indices = @transform_3, window_bounds = array<i64: 1, 128>}, {pipeline_mode = #tpu.pipeline_mode<synchronous>, transform_indices = @transform_4, window_bounds = array<i64: 1, 128>}, {pipeline_mode = #tpu.pipeline_mode<synchronous>, transform_indices = @transform_5, window_bounds = array<i64: 1, 128>}]} {
    %c0_i32 = arith.constant 0 : i32
    %0 = arith.cmpi eq, %arg0, %c0_i32 : i32
    %1 = arith.extui %0 : i1 to i32
    %c0_i32_0 = arith.constant 0 : i32
    %2 = arith.cmpi ne, %1, %c0_i32_0 : i32
    scf.if %2 {
      %cst_20 = arith.constant 0.000000e+00 : f32
      %26 = vector.broadcast %cst_20 : f32 to vector<1x128xf32>
      %c0_21 = arith.constant 0 : index
      %c0_22 = arith.constant 0 : index
      %27 = vector.load %arg7[%c0_21, %c0_22] : memref<1x128xf32, #tpu.memory_space<vmem>>, vector<1x128xf32>
      tpu.vector_store %arg7[%c0_21, %c0_22], %26 {strides = array<i32>} : memref<1x128xf32, #tpu.memory_space<vmem>>, vector<1x128xf32>,
      %cst_23 = arith.constant 0.000000e+00 : f32
      %28 = vector.broadcast %cst_23 : f32 to vector<1x128xf32>
      %c0_24 = arith.constant 0 : index
      %c0_25 = arith.constant 0 : index
      %29 = vector.load %arg8[%c0_24, %c0_25] : memref<1x128xf32, #tpu.memory_space<vmem>>, vector<1x128xf32>
      tpu.vector_store %arg8[%c0_24, %c0_25], %28 {strides = array<i32>} : memref<1x128xf32, #tpu.memory_space<vmem>>, vector<1x128xf32>,
      %cst_26 = arith.constant 0.000000e+00 : f32
      %30 = vector.broadcast %cst_26 : f32 to vector<1x1xf32>
      %c0_27 = arith.constant 0 : index
      %c0_28 = arith.constant 0 : index
      %31 = vector.load %arg9[%c0_27, %c0_28] : memref<1x1xf32, #tpu.memory_space<vmem>>, vector<1x1xf32>
      tpu.vector_store %arg9[%c0_27, %c0_28], %30 {strides = array<i32>} : memref<1x1xf32, #tpu.memory_space<vmem>>, vector<1x1xf32>,
    } else {
    }
    %c0 = arith.constant 0 : index
    %c0_1 = arith.constant 0 : index
    %3 = vector.load %arg1[%c0, %c0_1] : memref<32x128xf32, #tpu.memory_space<vmem>>, vector<32x128xf32>
    %c0_2 = arith.constant 0 : index
    %c0_3 = arith.constant 0 : index
    %4 = vector.load %arg2[%c0_2, %c0_3] : memref<32x1xf32, #tpu.memory_space<vmem>>, vector<32x1xf32>
    %5 = vector.broadcast %4 : vector<32x1xf32> to vector<32x128xf32>
    %6 = arith.mulf %3, %5 : vector<32x128xf32>
    %c0_4 = arith.constant 0 : index
    %c0_5 = arith.constant 0 : index
    %7 = vector.load %arg7[%c0_4, %c0_5] : memref<1x128xf32, #tpu.memory_space<vmem>>, vector<1x128xf32>
    %cst = arith.constant dense<0.000000e+00> : vector<128xf32>
    %8 = vector.multi_reduction <add>, %6, %cst [0] : vector<32x128xf32> to vector<128xf32>
    %9 = vector.shape_cast %8 : vector<128xf32> to vector<1x128xf32>
    %10 = arith.addf %7, %9 : vector<1x128xf32>
    %c0_6 = arith.constant 0 : index
    %c0_7 = arith.constant 0 : index
    %11 = vector.load %arg7[%c0_6, %c0_7] : memref<1x128xf32, #tpu.memory_space<vmem>>, vector<1x128xf32>
    tpu.vector_store %arg7[%c0_6, %c0_7], %10 {strides = array<i32>} : memref<1x128xf32, #tpu.memory_space<vmem>>, vector<1x128xf32>,
    %c0_8 = arith.constant 0 : index
    %c0_9 = arith.constant 0 : index
    %12 = vector.load %arg8[%c0_8, %c0_9] : memref<1x128xf32, #tpu.memory_space<vmem>>, vector<1x128xf32>
    %13 = arith.mulf %6, %3 : vector<32x128xf32>
    %cst_10 = arith.constant dense<0.000000e+00> : vector<128xf32>
    %14 = vector.multi_reduction <add>, %13, %cst_10 [0] : vector<32x128xf32> to vector<128xf32>
    %15 = vector.shape_cast %14 : vector<128xf32> to vector<1x128xf32>
    %16 = arith.addf %12, %15 : vector<1x128xf32>
    %c0_11 = arith.constant 0 : index
    %c0_12 = arith.constant 0 : index
    %17 = vector.load %arg8[%c0_11, %c0_12] : memref<1x128xf32, #tpu.memory_space<vmem>>, vector<1x128xf32>
    tpu.vector_store %arg8[%c0_11, %c0_12], %16 {strides = array<i32>} : memref<1x128xf32, #tpu.memory_space<vmem>>, vector<1x128xf32>,
    %c0_13 = arith.constant 0 : index
    %c0_14 = arith.constant 0 : index
    %18 = vector.load %arg9[%c0_13, %c0_14] : memref<1x1xf32, #tpu.memory_space<vmem>>, vector<1x1xf32>
    %cst_15 = arith.constant dense<0.000000e+00> : vector<1xf32>
    %19 = vector.multi_reduction <add>, %4, %cst_15 [0] : vector<32x1xf32> to vector<1xf32>
    %20 = vector.shape_cast %19 : vector<1xf32> to vector<1x1xf32>
    %21 = arith.addf %18, %20 : vector<1x1xf32>
    %c0_16 = arith.constant 0 : index
    %c0_17 = arith.constant 0 : index
    %22 = vector.load %arg9[%c0_16, %c0_17] : memref<1x1xf32, #tpu.memory_space<vmem>>, vector<1x1xf32>
    tpu.vector_store %arg9[%c0_16, %c0_17], %21 {strides = array<i32>} : memref<1x1xf32, #tpu.memory_space<vmem>>, vector<1x1xf32>,
    %c0_i32_18 = arith.constant 0 : i32
    %23 = arith.cmpi eq, %arg0, %c0_i32_18 : i32
    %24 = arith.extui %23 : i1 to i32
    %c0_i32_19 = arith.constant 0 : i32
    %25 = arith.cmpi ne, %24, %c0_i32_19 : i32
    scf.if %25 {
      %c0_20 = arith.constant 0 : index
      %c0_21 = arith.constant 0 : index
      %26 = vector.load %arg9[%c0_20, %c0_21] : memref<1x1xf32, #tpu.memory_space<vmem>>, vector<1x1xf32>
      %cst_22 = arith.constant 1.000000e+00 : f32
      %27 = vector.broadcast %cst_22 : f32 to vector<1x1xf32>
      %28 = arith.maximumf %26, %27 : vector<1x1xf32>
      %cst_23 = arith.constant 1.000000e+00 : f32
      %29 = vector.broadcast %cst_23 : f32 to vector<1x1xf32>
      %30 = arith.divf %29, %28 : vector<1x1xf32>
      %c0_24 = arith.constant 0 : index
      %c0_25 = arith.constant 0 : index
      %31 = vector.load %arg7[%c0_24, %c0_25] : memref<1x128xf32, #tpu.memory_space<vmem>>, vector<1x128xf32>
      %32 = vector.broadcast %30 : vector<1x1xf32> to vector<1x128xf32>
      %33 = arith.mulf %31, %32 : vector<1x128xf32>
      %c0_26 = arith.constant 0 : index
      %c0_27 = arith.constant 0 : index
      %34 = vector.load %arg8[%c0_26, %c0_27] : memref<1x128xf32, #tpu.memory_space<vmem>>, vector<1x128xf32>
      %35 = vector.broadcast %30 : vector<1x1xf32> to vector<1x128xf32>
      %36 = arith.mulf %34, %35 : vector<1x128xf32>
      %37 = arith.mulf %33, %33 : vector<1x128xf32>
      %38 = arith.subf %36, %37 : vector<1x128xf32>
      %cst_28 = arith.constant 0.000000e+00 : f32
      %39 = vector.broadcast %cst_28 : f32 to vector<1x128xf32>
      %40 = arith.maximumf %38, %39 : vector<1x128xf32>
      %cst_29 = arith.constant 9.99999974E-6 : f32
      %41 = vector.broadcast %cst_29 : f32 to vector<1x128xf32>
      %42 = arith.addf %40, %41 : vector<1x128xf32>
      %43 = math.rsqrt %42 : vector<1x128xf32>
      %c0_30 = arith.constant 0 : index
      %c0_31 = arith.constant 0 : index
      %44 = vector.load %arg3[%c0_30, %c0_31] : memref<1x128xf32, #tpu.memory_space<vmem>>, vector<1x128xf32>
      %45 = arith.mulf %43, %44 : vector<1x128xf32>
      %cst_32 = arith.constant 1.000000e+00 : f32
      %46 = vector.broadcast %cst_32 : f32 to vector<1x128xf32>
      %47 = arith.subf %45, %46 : vector<1x128xf32>
      %c0_33 = arith.constant 0 : index
      %c0_34 = arith.constant 0 : index
      %48 = vector.load %arg5[%c0_33, %c0_34] : memref<1x128xf32, #tpu.memory_space<vmem>>, vector<1x128xf32>
      tpu.vector_store %arg5[%c0_33, %c0_34], %47 {strides = array<i32>} : memref<1x128xf32, #tpu.memory_space<vmem>>, vector<1x128xf32>,
      %c0_35 = arith.constant 0 : index
      %c0_36 = arith.constant 0 : index
      %49 = vector.load %arg4[%c0_35, %c0_36] : memref<1x128xf32, #tpu.memory_space<vmem>>, vector<1x128xf32>
      %50 = arith.mulf %33, %45 : vector<1x128xf32>
      %51 = arith.subf %49, %50 : vector<1x128xf32>
      %c0_37 = arith.constant 0 : index
      %c0_38 = arith.constant 0 : index
      %52 = vector.load %arg6[%c0_37, %c0_38] : memref<1x128xf32, #tpu.memory_space<vmem>>, vector<1x128xf32>
      tpu.vector_store %arg6[%c0_37, %c0_38], %51 {strides = array<i32>} : memref<1x128xf32, #tpu.memory_space<vmem>>, vector<1x128xf32>,
    } else {
    }
    return
  }
  func.func @transform_0(%arg0: i32) -> (i32, i32) {
    %c0_i32 = arith.constant 0 : i32
    %c0_i32_0 = arith.constant 0 : i32
    return %arg0, %c0_i32 : i32, i32
  }
  func.func @transform_1(%arg0: i32) -> (i32, i32) {
    %c0_i32 = arith.constant 0 : i32
    %c0_i32_0 = arith.constant 0 : i32
    return %arg0, %c0_i32 : i32, i32
  }
  func.func @transform_2(%arg0: i32) -> (i32, i32) {
    %c0_i32 = arith.constant 0 : i32
    %c0_i32_0 = arith.constant 0 : i32
    %c0_i32_1 = arith.constant 0 : i32
    return %c0_i32, %c0_i32_0 : i32, i32
  }
  func.func @transform_3(%arg0: i32) -> (i32, i32) {
    %c0_i32 = arith.constant 0 : i32
    %c0_i32_0 = arith.constant 0 : i32
    %c0_i32_1 = arith.constant 0 : i32
    return %c0_i32, %c0_i32_0 : i32, i32
  }
  func.func @transform_4(%arg0: i32) -> (i32, i32) {
    %c0_i32 = arith.constant 0 : i32
    %c0_i32_0 = arith.constant 0 : i32
    %c0_i32_1 = arith.constant 0 : i32
    return %c0_i32, %c0_i32_0 : i32, i32
  }
  func.func @transform_5(%arg0: i32) -> (i32, i32) {
    %c0_i32 = arith.constant 0 : i32
    %c0_i32_0 = arith.constant 0 : i32
    %c0_i32_1 = arith.constant 0 : i32
    return %c0_i32, %c0_i32_0 : i32, i32
  }
}

</mosaic_0001>

<bundles_post_ra>
// kernel: masked_batch_norm_1d.2
= control target key start
LH: loop header
LB: loop body
LE: loop exit
PB: predicated region body
PF: predicated region fallthrough
CT: control target
= control target key end

     0   :  { %vm88_vm0 = vcmask 7168   ;;  %vm25_vm1 = vcmask 0   ;;  %v155_v0 = vmov 0   ;;  %v156_v4 = vmov 0.0   ;;  %s229_s1 = inlined_call_operand.vmem [shape: f32[32,1], index: 1, kind: input, shape index: {}]   ;;  %s230_s0 = inlined_call_operand.vmem [shape: f32[32,128], index: 0, kind: input, shape index: {}]   ;;  %s231_s2 = inlined_call_operand.vmem [shape: f32[1,128], index: 2, kind: input, shape index: {}]   ;;  %s232_s3 = inlined_call_operand.vmem [shape: f32[1,128], index: 3, kind: input, shape index: {}]   ;;  %s233_s4 = inlined_call_operand.vmem [shape: f32[1,128], index: 4, kind: output, shape index: {0}]   ;;  %s234_s5 = inlined_call_operand.vmem [shape: f32[1,128], index: 5, kind: output, shape index: {1}]  }
   0x1   :  { %149 = vset.pattern.permute.xlu0 %v155_v0  ;;  %v31_v1 = vld [vmem:[%s229_s1] sm:$0xff]  ;;  %150 = vset.pattern.permute.xlu1 %v155_v0  ;;  %v33_v2 = vld [vmem:[%s229_s1 + $0x10] sm:$0xff]  ;;  %v32_v3 = vld [vmem:[%s229_s1 + $0x8] sm:$0xff]  ;;  %26 = vst.msk [vmem:[#allocation4] sm:$0x1] %vm25_vm1, %v156_v4  ;;  %v118_v62 = vlaneseq }
   0x2   :  { %23 = vst [vmem:[#allocation2] sm:$0x1] %v156_v4  ;;  %24 = vst [vmem:[#allocation3] sm:$0x1] %v156_v4  ;;  %37 = vperm.xlu0 %149, %v31_v1   ;;  %v89_v5 = vsel %vm88_vm0, %v31_v1, 0.0  ;;  %47 = vperm.xlu1 %150, %v33_v2   ;;  %v92_v6 = vsel %vm88_vm0, %v33_v2, 0.0 }
   0x3   :  { %v90_v7 = vsel %vm88_vm0, %v32_v3, 0.0  ;;  %v34_v8 = vld [vmem:[%s229_s1 + $0x18] sm:$0xff]  ;;  %v27_v24 = vld [vmem:[%s230_s0] sm:$0xff]  ;;  %v29_v27 = vld [vmem:[%s230_s0 + $0x10] sm:$0xff]  ;;  %v119_v63 = vshrl.u32 %v118_v62, 7 }
   0x4   :  { %v91_v9 = vadd.f32 %v90_v7, %v89_v5  ;;  %v94_v10 = vsel %vm88_vm0, %v34_v8, 0.0  ;;  %v28_v29 = vld [vmem:[%s230_s0 + $0x8] sm:$0xff]  ;;  %v30_v30 = vld [vmem:[%s230_s0 + $0x18] sm:$0xff] }
   0x5   :  { %v120_v0 = vsub.s32 0, %v119_v63 }
   0x6   :  { %v93_v11 = vadd.f32 %v92_v6, %v91_v9  ;;  %42 = vperm.xlu0 %149, %v32_v3   ;;  %52 = vperm.xlu1 %150, %v34_v8  }
   0x8   :  { %v95_v12 = vadd.f32 %v94_v10, %v93_v11  ;;  %v87_v18 = vld [vmem:[#allocation4] sm:$0x1]  ;;  %v130_v11 = vld [vmem:[%s231_s2] sm:$0x1] }
   0x9   :  { %v59_v55 = vld [vmem:[#allocation2] sm:$0x1]  ;;  %v71_v58 = vld [vmem:[#allocation3] sm:$0x1] }
   0xa   :  { %v96_v13 = vrot.slane %v95_v12, 4 }
   0xc   :  { %v97_v14 = vadd.f32 %v96_v13, %v95_v12 }
   0xe   :  { %v98_v15 = vrot.slane %v97_v14, 2 }
  0x10   :  { %v99_v16 = vadd.f32 %v98_v15, %v97_v14  ;;  %v134_v14 = vld [vmem:[%s232_s3] sm:$0x1] }
  0x12   :  { %v100_v17 = vrot.slane %v99_v16, 1 }
  0x14   :  { %v101_v19 = vadd.f32 %v100_v17, %v99_v16 }
  0x16   :  { %v102_v20 = vadd.f32 %v101_v19, %v87_v18 }
  0x18   :  { %104 = vst.msk [vmem:[#allocation4] sm:$0x1] %vm25_vm1, %v102_v20 }
  0x1f   :  { %v108_v21 = vld [vmem:[#allocation4] sm:$0x1] }
  0x20   :  { %v109_v22 = vmax.f32 %v108_v21, 1.0 }
  0x22   :  { %151 = vrcp.f32 %v109_v22 }
  0x2c   :  { %v152_v23 = vpop.eup %151 }
  0x2d   :  { %115 = vperm.xlu0 %149, %v152_v23  }
  0x81   :  { %v38_v25 = vpop.permute.xlu0 %37  ;;  %v48_v26 = vpop.permute.xlu1 %47 }
  0x82   :  { %v55_v28 = vmul.f32 %v38_v25, %v27_v24  ;;  %v57_v31 = vmul.f32 %v48_v26, %v29_v27 }
  0x84   :  { %v72_v34 = vmul.f32 %v55_v28, %v27_v24  ;;  %v74_v37 = vmul.f32 %v57_v31, %v29_v27 }
  0x85   :  { %v43_v32 = vpop.permute.xlu0 %42  ;;  %v53_v33 = vpop.permute.xlu1 %52 }
  0x86   :  { %v56_v35 = vmul.f32 %v43_v32, %v28_v29  ;;  %v58_v36 = vmul.f32 %v53_v33, %v30_v30 }
  0x88   :  { %v60_v38 = vadd.f32 %v56_v35, %v55_v28  ;;  %v73_v39 = vmul.f32 %v56_v35, %v28_v29  ;;  %v75_v42 = vmul.f32 %v58_v36, %v30_v30 }
  0x8a   :  { %v76_v40 = vadd.f32 %v73_v39, %v72_v34  ;;  %v61_v41 = vadd.f32 %v60_v38, %v57_v31 }
  0x8c   :  { %v62_v43 = vadd.f32 %v61_v41, %v58_v36  ;;  %v77_v44 = vadd.f32 %v76_v40, %v74_v37 }
  0x8e   :  { %v63_v45 = vrot.slane %v62_v43, 4  ;;  %v78_v46 = vadd.f32 %v77_v44, %v75_v42 }
  0x90   :  { %v64_v47 = vadd.f32 %v63_v45, %v62_v43  ;;  %v79_v48 = vrot.slane %v78_v46, 4 }
  0x92   :  { %v65_v49 = vrot.slane %v64_v47, 2  ;;  %v80_v50 = vadd.f32 %v79_v48, %v78_v46 }
  0x94   :  { %v66_v51 = vadd.f32 %v65_v49, %v64_v47  ;;  %v81_v52 = vrot.slane %v80_v50, 2 }
  0x96   :  { %v67_v53 = vrot.slane %v66_v51, 1  ;;  %v82_v54 = vadd.f32 %v81_v52, %v80_v50 }
  0x98   :  { %v68_v56 = vadd.f32 %v67_v53, %v66_v51  ;;  %v83_v57 = vrot.slane %v82_v54, 1 }
  0x9a   :  { %v69_v59 = vadd.f32 %v68_v56, %v59_v55  ;;  %v84_v60 = vadd.f32 %v83_v57, %v82_v54 }
  0x9c   :  { %70 = vst [vmem:[#allocation2] sm:$0x1] %v69_v59  ;;  %v85_v61 = vadd.f32 %v84_v60, %v71_v58 }
  0x9e   :  { %86 = vst [vmem:[#allocation3] sm:$0x1] %v85_v61 }
  0xa3   :  { %v112_v3 = vld [vmem:[#allocation2] sm:$0x1] }
  0xa5   :  { %v123_v5 = vld [vmem:[#allocation3] sm:$0x1] }
  0xac   :  { %v116_v1 = vpop.permute.xlu0 %115 }
  0xad   :  { %v121_v2 = vrot.slane %v116_v1, %v120_v0 }
  0xaf   :  { %v122_v4 = vmul.f32 %v121_v2, %v112_v3  ;;  %v124_v6 = vmul.f32 %v123_v5, %v121_v2 }
  0xb1   :  { %v125_v7 = vmul.f32 %v122_v4, %v122_v4 }
  0xb3   :  { %v126_v8 = vsub.f32 %v124_v6, %v125_v7 }
  0xb5   :  { %v127_v9 = vmax.f32 %v126_v8, 0.0 }
  0xb7   :  { %v128_v10 = vadd.f32 1e-05, %v127_v9 }
  0xb9   :  { %153 = vrsqrt.f32 %v128_v10 }
  0xc3   :  { %v154_v12 = vpop.eup %153 }
  0xc4   :  { %v131_v13 = vmul.f32 %v154_v12, %v130_v11 }
  0xc6   :  { %v146_v15 = vadd.f32 -1.0, %v131_v13  ;;  %v135_v16 = vmul.f32 %v131_v13, %v122_v4 }
  0xc8   :  { %133 = vst [vmem:[%s233_s4] sm:$0x1] %v146_v15  ;;  %v136_v17 = vsub.f32 %v134_v14, %v135_v16 }
  0xca   :  { %137 = vst [vmem:[%s234_s5] sm:$0x1] %v136_v17 }

// kernel: masked_batch_norm_1d.3
= control target key start
LH: loop header
LB: loop body
LE: loop exit
PB: predicated region body
PF: predicated region fallthrough
CT: control target
= control target key end

     0   :  { %v128_v2 = vmov 0   ;;  %s199_s0 = inlined_call_operand.vmem [shape: f32[32,128], index: 0, kind: input, shape index: {}]   ;;  %s200_s1 = inlined_call_operand.vmem [shape: f32[32,1], index: 1, kind: input, shape index: {}]   ;;  %s201_s2 = inlined_call_operand.vmem [shape: f32[1,128], index: 2, kind: input, shape index: {}]   ;;  %s202_s3 = inlined_call_operand.vmem [shape: f32[1,128], index: 3, kind: input, shape index: {}]   ;;  %s203_s4 = inlined_call_operand.hbm [shape: f32[32,128], index: 4, kind: output, shape index: {}]  }
   0x1   :  { %v24_v0 = vld [vmem:[%s200_s1 + $0x10] sm:$0xff]  ;;  %v22_v1 = vld [vmem:[%s200_s1] sm:$0xff]  ;;  %103 = vset.pattern.permute.xlu1 %v128_v2  ;;  %102 = vset.pattern.permute.xlu0 %v128_v2  ;;  %v25_v3 = vld [vmem:[%s200_s1 + $0x18] sm:$0xff] }
   0x2   :  { %60 = vperm.xlu1 %103, %v24_v0   ;;  %50 = vperm.xlu0 %102, %v22_v1   ;;  %v23_v4 = vld [vmem:[%s200_s1 + $0x8] sm:$0xff] }
   0x3   :  { %9 = vsyncpa [#allocation3], 0  ;;  %v96_v5 = vld [vmem:[%s201_s2] ss:$0 sm:$0xff]  ;;  %v20_v6 = vld [vmem:[%s199_s0 + $0x10] sm:$0xff] }
   0x4   :  { %v18_v7 = vld [vmem:[%s199_s0] sm:$0xff]  ;;  %v35_v8 = vmul.f32 %v96_v5, %v20_v6  ;;  %v21_v11 = vld [vmem:[%s199_s0 + $0x18] sm:$0xff]  ;;  %v19_v12 = vld [vmem:[%s199_s0 + $0x8] sm:$0xff] }
   0x5   :  { %v33_v9 = vmul.f32 %v96_v5, %v18_v7  ;;  %v97_v10 = vld [vmem:[%s202_s3] ss:$0 sm:$0xff]  ;;  %v36_v15 = vmul.f32 %v96_v5, %v21_v11  ;;  %v34_v16 = vmul.f32 %v96_v5, %v19_v12  ;;  %s129_s3 = smov [#allocation2]  }
   0x6   :  { %65 = vperm.xlu1 %103, %v25_v3   ;;  %55 = vperm.xlu0 %102, %v23_v4   ;;  %v46_v13 = vadd.f32 %v97_v10, %v35_v8  ;;  %s85_s7 = sshll.u32 %s129_s3, 4  ;;  %s86_s7 = int_to_ptr.vmem [resolvable:$true] %s85_s7 }
   0x7   :  { %v44_v14 = vadd.f32 %v97_v10, %v33_v9  ;;  %v47_v21 = vadd.f32 %v97_v10, %v36_v15  ;;  %v45_v22 = vadd.f32 %v97_v10, %v34_v16  ;;  %s104_s0 = scalar_lea.vmem %s86_s7, 512  ;;  %p109_p1 = scmp.lt.s32.totalorder %s86_s7, %s86_s7 }
   0x8   :  { %p105_p0 = scmp.ne.s32.totalorder %s86_s7, %s104_s0  ;;  %p110_p2 = scmp.lt.s32.totalorder %s104_s0, %s104_s0 }
   0xa   :  { %p111_p3 = por %p110_p2, %p109_p1 }
   0xc   :  { %p112_p4 = pnand %p111_p3, %p105_p0 }
  0x81   :  { %v61_v17 = vpop.permute.xlu1 %60  ;;  %v51_v18 = vpop.permute.xlu0 %50 }
  0x82   :  { %v70_v19 = vmul.f32 %v61_v17, %v46_v13  ;;  %v68_v20 = vmul.f32 %v51_v18, %v44_v14 }
  0x84   :  { %v74_v23 = vadd.f32 %v70_v19, %v20_v6  ;;  %v72_v24 = vadd.f32 %v68_v20, %v18_v7 }
  0x85   :  { %v66_v25 = vpop.permute.xlu1 %65  ;;  %v56_v26 = vpop.permute.xlu0 %55 }
  0x86   :  { %78 = vst [vmem:[#allocation2 + $0x10] sm:$0xff] %v74_v23  ;;  %76 = vst [vmem:[#allocation2] sm:$0xff] %v72_v24  ;;  %v71_v27 = vmul.f32 %v66_v25, %v47_v21  ;;  %v69_v28 = vmul.f32 %v56_v26, %v45_v22 }
  0x88   :  { %v75_v29 = vadd.f32 %v71_v27, %v21_v11  ;;  %v73_v30 = vadd.f32 %v69_v28, %v19_v12 }
  0x8a   :  { %79 = vst [vmem:[#allocation2 + $0x18] sm:$0xff] %v75_v29  ;;  %77 = vst [vmem:[#allocation2 + $0x8] sm:$0xff] %v73_v30 }
  0x8b   :  { %115 = shalt.err (!%p112_p4)
}
  0x8c   :  { %s116_s10 = scalar_lea.hbm %s203_s4, 512 }
  0x8d   :  { %p117_p5 = scmp.ne.s32.totalorder %s203_s4, %s116_s10  ;;  %p120_p6 = scmp.lt.u32.totalorder %s116_s10, %s203_s4 }
  0x8f   :  { %p122_p7 = pnand %p120_p6, %p117_p5 }
  0x91   :  { %125 = shalt.err (!%p122_p7)
}
  0x92   :  { %s130_s15 = smov 128   ;;  %s131_s16 = smov 8  }
  0x93   :  { %91 = dma.vmem_to_hbm [thread:$0]  %s86_s7, 512, %s203_s4, [#allocation3], %s130_s15, %s130_s15, %s131_s16  }
  0x94   :  { %126 = dma.done.wait [#allocation3], 512  }
  0x95   :  { %127 = vsyncadd [#allocation3], 4294966784 }
  0x96   :  { %95 = vsyncpa [#allocation3], 1 }

</bundles_post_ra>
